<compile_context>
chip_gen: v5e
topology: v5e:2x2
jax: 0.10.0
libtpu: 0.0.40
codegen_flags: <defaults>
</compile_context>

<pallas_src>
import numpy as np
import jax
import jax.numpy as jnp
from jax.experimental import pallas as pl
from jax.experimental.pallas import tpu as pltpu

_LANE = 128


def _round_up(x, m):
    return ((x + m - 1) // m) * m


def _lj_kernel(x_ref, a_ref, b_ref, o_ref):
    # x_ref: (TM, P) distance tile, examples on rows (exactly as stored in HBM)
    # a_ref: (P, 1)  eps_pair * rm_pair^12
    # b_ref: (P, 1)  2 * eps_pair * rm_pair^6
    # o_ref: (1, TM) lane-dense per-example energy slab
    xt = jnp.transpose(x_ref[...])            # (P, TM): XLU transpose, hidden under DMA
    inv = pl.reciprocal(xt)                   # exact 1/x (EUP rcp + refinement)
    # TODO(synk): pl.reciprocal(..., approx=True) trims a few VALU ops/elem on
    # VALU-bound v7x, but its ~2^-12 error is amplified ~12x through inv^12 —
    # only enable it if the caller's tolerance allows ~3e-3 relative error.
    inv2 = inv * inv
    inv6 = inv2 * inv2 * inv2                 # (1/x)^6
    term = inv6 * (a_ref[...] * inv6 - b_ref[...])   # eps*(sig^12 - 2*sig^6)
    o_ref[...] = jnp.sum(term, axis=0, keepdims=True).astype(o_ref.dtype)


def lj_namd_energy(in_feat, eps_parameters, rmin_parameters, pair_indices,
                   *, tile_m=4096):
    """LJ prior energy (LJ_namd.forward) as a Pallas TPU kernel.

    in_feat:          (N, P) float32 pairwise distances (P = #non-bonded pairs)
    eps_parameters:   (1, B) float32 per-bead eps            ('eps_parameters')
    rmin_parameters:  (1, B) float32 per-bead sqrt(rmin)     ('rmin_parameters')
    pair_indices:     (P, 2) int32 (i, j) bead indices (the 'what' list)
    returns:          (N, 1) float32 energy
    """
    in_feat = jnp.asarray(in_feat, jnp.float32)
    N, P = in_feat.shape

    # Per-pair constants; numerically identical to the one-hot start/end
    # matmuls of the reference forward (they only touch the parameters).
    eps = jnp.asarray(eps_parameters, jnp.float32).reshape(-1)
    rmin = jnp.asarray(rmin_parameters, jnp.float32).reshape(-1) ** 2
    pair_indices = jnp.asarray(pair_indices, jnp.int32)
    i_idx = pair_indices[:, 0]
    j_idx = pair_indices[:, 1]
    eps_pair = jnp.sqrt(eps[i_idx] * eps[j_idx])
    rm_pair = 0.5 * (rmin[i_idx] + rmin[j_idx])
    rm2 = rm_pair * rm_pair
    rm6 = rm2 * rm2 * rm2
    # NOTE: rm^12 in f32 is safe for physical rmin ranges (rm << 1e3); compute
    # these constants in float64 upstream if the parameter range is ever wider.
    a_pair = (eps_pair * rm6 * rm6).reshape(P, 1)     # eps * rm^12
    b_pair = (2.0 * eps_pair * rm6).reshape(P, 1)     # 2 * eps * rm^6

    # Row (example) tiling: keep tile_m a multiple of 128 so the in-kernel
    # transpose and the lane-dense output stay on the fast layout path.
    tile_m = max(_LANE, (int(tile_m) // _LANE) * _LANE)
    if N <= tile_m:
        tile_m = _round_up(N, _LANE)                  # single block
    elif N <= 2 * tile_m:
        tile_m = _round_up(pl.cdiv(N, 2), _LANE)      # 2 balanced blocks (v7x: 2 TCs)
    grid_m = pl.cdiv(N, tile_m)                       # ragged last block handled by Pallas

    out = pl.pallas_call(
        _lj_kernel,
        out_shape=jax.ShapeDtypeStruct((1, grid_m * tile_m), jnp.float32),
        grid_spec=pltpu.PrefetchScalarGridSpec(
            num_scalar_prefetch=0,
            grid=(grid_m,),
            in_specs=[
                pl.BlockSpec((tile_m, P), lambda i: (i, 0)),  # distance rows (no transpose/pad)
                pl.BlockSpec((P, 1), lambda i: (0, 0)),       # a = eps*rm^12 (resident)
                pl.BlockSpec((P, 1), lambda i: (0, 0)),       # b = 2*eps*rm^6 (resident)
            ],
            out_specs=pl.BlockSpec((1, tile_m), lambda i: (0, i)),
        ),
        compiler_params=pltpu.CompilerParams(
            dimension_semantics=("parallel",),
        ),
    )(in_feat, a_pair, b_pair)

    # Garbage energies in padded lanes (rows past N) are discarded here.
    return out[0, :N].reshape(N, 1)


def reference_energy(in_feat, eps_parameters, rmin_parameters, what, n_beads):
    # Pure-JAX reference mirroring the PyTorch forward (one-hot matmuls).
    P = len(what)
    start = np.zeros((P, n_beads), dtype=np.float32)
    end = np.zeros((P, n_beads), dtype=np.float32)
    for i, (a, b) in enumerate(what):
        start[i, a] = 1.0
        end[i, b] = 1.0
    start = jnp.asarray(start)
    end = jnp.asarray(end)
    e = jnp.asarray(eps_parameters, jnp.float32).reshape(-1)
    r = jnp.asarray(rmin_parameters, jnp.float32).reshape(-1)
    n = in_feat.shape[0]
    sig = (start @ (r ** 2) + end @ (r ** 2)) / 2.0 / in_feat      # (N, P)
    energy = jnp.sum(jnp.sqrt((start @ e) * (end @ e))
                     * (sig ** 12 - 2.0 * sig ** 6), axis=1).reshape(n, 1)
    return energy


if __name__ == "__main__":
    # 'fibri' molecule: 15 beads, 14 bonds -> 91 non-bonded pairs.
    n_beads = 15
    bond_list = [(0, 11), (1, 6), (2, 3), (2, 6), (2, 9), (3, 4), (4, 10),
                 (5, 7), (5, 14), (8, 9), (8, 13), (11, 12), (12, 13), (12, 14)]
    what = [(i, j) for i in range(n_beads) for j in range(i + 1, n_beads)
            if (i, j) not in bond_list]
    P = len(what)                                    # 91
    pair_indices = jnp.asarray(np.array(what, dtype=np.int32))

    key = jax.random.PRNGKey(0)
    k1, k2, k3 = jax.random.split(key, 3)

    N = 10  # small, non-multiple-of-tile example count (exercises ragged path)
    # Per-bead eps > 0 and rmin ~ 1; the module stores sqrt(rmin) as parameter.
    eps_parameters = 0.05 + 0.25 * jax.random.uniform(k1, (1, n_beads), jnp.float32)
    rmin_vals = 0.9 + 0.3 * jax.random.uniform(k2, (1, n_beads), jnp.float32)
    rmin_parameters = jnp.sqrt(rmin_vals)

    # Pairwise distances near/above rmin so sigma^12 stays well conditioned.
    in_feat = 0.9 + 1.2 * jax.random.uniform(k3, (N, P), jnp.float32)

    out = lj_namd_energy(in_feat, eps_parameters, rmin_parameters, pair_indices)
    out = jax.block_until_ready(out)

    ref = reference_energy(in_feat, eps_parameters, rmin_parameters, what, n_beads)
    assert out.shape == (N, 1), out.shape
    assert jnp.allclose(out, ref, rtol=1e-4, atol=1e-4), (out, ref)

    print("KERNEL_OK")
</pallas_src>

<mosaic_0001>
module attributes {stable_mosaic.version = 11 : i64} {
  func.func @_lj_kernel(%arg0: i32, %arg1: memref<128x91xf32, #tpu.memory_space<vmem>>, %arg2: memref<91x1xf32, #tpu.memory_space<vmem>>, %arg3: memref<91x1xf32, #tpu.memory_space<vmem>>, %arg4: memref<1x128xf32, #tpu.memory_space<vmem>>) attributes {dimension_semantics = [#tpu.dimension_semantics<parallel>], iteration_bounds = array<i64: 1>, scalar_prefetch = 0 : i64, scratch_operands = 0 : i64, tpu.core_type = #tpu.core_type<tc>, window_params = [{transform_indices = @transform_0, window_bounds = array<i64: 128, 91>}, {pipeline_mode = #tpu.pipeline_mode<synchronous>, transform_indices = @transform_1, window_bounds = array<i64: 91, 1>}, {pipeline_mode = #tpu.pipeline_mode<synchronous>, transform_indices = @transform_2, window_bounds = array<i64: 91, 1>}, {transform_indices = @transform_3, window_bounds = array<i64: 1, 128>}]} {
    %c0 = arith.constant 0 : index
    %c0_0 = arith.constant 0 : index
    %0 = vector.load %arg1[%c0, %c0_0] : memref<128x91xf32, #tpu.memory_space<vmem>>, vector<128x91xf32>
    %1 = tpu.transpose %0, [1, 0] : vector<128x91xf32> -> vector<91x128xf32>
    %2 = tpu.reciprocal %1 : vector<91x128xf32> -> vector<91x128xf32>
    %3 = arith.mulf %2, %2 : vector<91x128xf32>
    %4 = arith.mulf %3, %3 : vector<91x128xf32>
    %5 = arith.mulf %4, %3 : vector<91x128xf32>
    %c0_1 = arith.constant 0 : index
    %c0_2 = arith.constant 0 : index
    %6 = vector.load %arg2[%c0_1, %c0_2] : memref<91x1xf32, #tpu.memory_space<vmem>>, vector<91x1xf32>
    %7 = vector.broadcast %6 : vector<91x1xf32> to vector<91x128xf32>
    %8 = arith.mulf %7, %5 : vector<91x128xf32>
    %c0_3 = arith.constant 0 : index
    %c0_4 = arith.constant 0 : index
    %9 = vector.load %arg3[%c0_3, %c0_4] : memref<91x1xf32, #tpu.memory_space<vmem>>, vector<91x1xf32>
    %10 = vector.broadcast %9 : vector<91x1xf32> to vector<91x128xf32>
    %11 = arith.subf %8, %10 : vector<91x128xf32>
    %12 = arith.mulf %5, %11 : vector<91x128xf32>
    %cst = arith.constant dense<0.000000e+00> : vector<128xf32>
    %13 = vector.multi_reduction <add>, %12, %cst [0] : vector<91x128xf32> to vector<128xf32>
    %14 = vector.shape_cast %13 : vector<128xf32> to vector<1x128xf32>
    %c0_5 = arith.constant 0 : index
    %c0_6 = arith.constant 0 : index
    %15 = vector.load %arg4[%c0_5, %c0_6] : memref<1x128xf32, #tpu.memory_space<vmem>>, vector<1x128xf32>
    tpu.vector_store %arg4[%c0_5, %c0_6], %14 {strides = array<i32>} : memref<1x128xf32, #tpu.memory_space<vmem>>, vector<1x128xf32>,
    return
  }
  func.func @transform_0(%arg0: i32) -> (i32, i32) {
    %c0_i32 = arith.constant 0 : i32
    %c0_i32_0 = arith.constant 0 : i32
    return %arg0, %c0_i32 : i32, i32
  }
  func.func @transform_1(%arg0: i32) -> (i32, i32) {
    %c0_i32 = arith.constant 0 : i32
    %c0_i32_0 = arith.constant 0 : i32
    %c0_i32_1 = arith.constant 0 : i32
    return %c0_i32, %c0_i32_0 : i32, i32
  }
  func.func @transform_2(%arg0: i32) -> (i32, i32) {
    %c0_i32 = arith.constant 0 : i32
    %c0_i32_0 = arith.constant 0 : i32
    %c0_i32_1 = arith.constant 0 : i32
    return %c0_i32, %c0_i32_0 : i32, i32
  }
  func.func @transform_3(%arg0: i32) -> (i32, i32) {
    %c0_i32 = arith.constant 0 : i32
    %c0_i32_0 = arith.constant 0 : i32
    return %c0_i32, %arg0 : i32, i32
  }
}

</mosaic_0001>

<bundles_post_ra>
// kernel: tpu_custom_call.1
= control target key start
LH: loop header
LB: loop body
LE: loop exit
PB: predicated region body
PF: predicated region fallthrough
CT: control target
= control target key end

     0   :  { %v538_v2 = vmov 0   ;;  %s852_s0 = inlined_call_operand.vmem [shape: f32[10,91], index: 0, kind: input, shape index: {}]   ;;  %s853_s1 = inlined_call_operand.vmem [shape: f32[91,1], index: 1, kind: input, shape index: {}]   ;;  %s854_s2 = inlined_call_operand.vmem [shape: f32[91,1], index: 2, kind: input, shape index: {}]   ;;  %s855_s3 = inlined_call_operand.hbm [shape: f32[1,128], index: 3, kind: output, shape index: {}]  }
   0x1   :  { %v15_v0 = vld [vmem:[%s852_s0] sm:$0xff]  ;;  %485 = vset.pattern.permute.xlu1 %v538_v2  ;;  %v269_v3 = vld [vmem:[%s853_s1 + $0x10] sm:$0xff]  ;;  %486 = vset.pattern.permute.xlu2 %v538_v2 }
   0x2   :  { %v267_v1 = vld [vmem:[%s853_s1] sm:$0xff]  ;;  %31 = vxpose.xlu0.b32.start [1/16] (narrow) %v15_v0, 96  ;;  %291 = vperm.xlu2 %486, %v269_v3  }
   0x3   :  { %281 = vperm.xlu1 %485, %v267_v1  }
   0x4   :  { %8 = vsyncpa [#allocation3], 0  ;;  %v16_v4 = vld [vmem:[%s852_s0 + $0x8] sm:$0xff]  ;;  %v270_v6 = vld [vmem:[%s853_s1 + $0x18] sm:$0xff]  ;;  %s474_s12 = sshll.u32 %s855_s3, 4  ;;  %s475_s12 = int_to_ptr.hbm [resolvable:$true] %s474_s12 }
   0x5   :  { %v268_v5 = vld [vmem:[%s853_s1 + $0x8] sm:$0xff]  ;;  %v17_v7 = vld [vmem:[%s852_s0 + $0x10] sm:$0xff]  ;;  %v271_v8 = vld [vmem:[%s853_s1 + $0x20] sm:$0xff] }
   0x6   :  { %v272_v9 = vld [vmem:[%s853_s1 + $0x28] sm:$0xff]  ;;  %v18_v10 = vld [vmem:[%s852_s0 + $0x18] sm:$0xff]  ;;  %v273_v11 = vld [vmem:[%s853_s1 + $0x30] sm:$0xff] }
   0x7   :  { %v274_v12 = vld [vmem:[%s853_s1 + $0x38] sm:$0xff]  ;;  %v19_v13 = vld [vmem:[%s852_s0 + $0x20] sm:$0xff]  ;;  %v276_v15 = vld [vmem:[%s853_s1 + $0x48] sm:$0xff] }
   0x8   :  { %v275_v14 = vld [vmem:[%s853_s1 + $0x40] sm:$0xff]  ;;  %v20_v16 = vld [vmem:[%s852_s0 + $0x28] sm:$0xff]  ;;  %v277_v17 = vld [vmem:[%s853_s1 + $0x50] sm:$0xff] }
   0x9   :  { %v351_v18 = vld [vmem:[%s854_s2] sm:$0xff]  ;;  %v21_v19 = vld [vmem:[%s852_s0 + $0x30] sm:$0xff]  ;;  %v352_v20 = vld [vmem:[%s854_s2 + $0x8] sm:$0xff] }
   0xa   :  { %32 = vxpose.xlu0.b32.cont [2/16] (narrow) %v16_v4, 96  ;;  %296 = vperm.xlu2 %486, %v270_v6   ;;  %v353_v21 = vld [vmem:[%s854_s2 + $0x10] sm:$0xff]  ;;  %v22_v22 = vld [vmem:[%s852_s0 + $0x38] sm:$0xff]  ;;  %v355_v24 = vld [vmem:[%s854_s2 + $0x20] sm:$0xff] }
   0xb   :  { %286 = vperm.xlu1 %485, %v268_v5   ;;  %v354_v23 = vld [vmem:[%s854_s2 + $0x18] sm:$0xff]  ;;  %v23_v25 = vld [vmem:[%s852_s0 + $0x40] sm:$0xff]  ;;  %v356_v26 = vld [vmem:[%s854_s2 + $0x28] sm:$0xff] }
   0xc   :  { %v357_v27 = vld [vmem:[%s854_s2 + $0x30] sm:$0xff]  ;;  %v24_v28 = vld [vmem:[%s852_s0 + $0x48] sm:$0xff]  ;;  %v358_v29 = vld [vmem:[%s854_s2 + $0x38] sm:$0xff] }
   0xd   :  { %v359_v30 = vld [vmem:[%s854_s2 + $0x40] sm:$0xff]  ;;  %v25_v31 = vld [vmem:[%s852_s0 + $0x50] sm:$0xff]  ;;  %v360_v32 = vld [vmem:[%s854_s2 + $0x48] sm:$0xff] }
   0xe   :  { %v278_v33 = vld [vmem:[%s853_s1 + $0x58] sm:$0x7]  ;;  %v361_v35 = vld [vmem:[%s854_s2 + $0x50] sm:$0xff]  ;;  %v27_v37 = vld [vmem:[%s852_s0 + $0x60] sm:$0xff] }
   0xf   :  { %v26_v34 = vld [vmem:[%s852_s0 + $0x58] sm:$0xff]  ;;  %v28_v38 = vld [vmem:[%s852_s0 + $0x68] sm:$0xff]  ;;  %v29_v39 = vld [vmem:[%s852_s0 + $0x70] sm:$0xff] }
  0x10   :  { %v362_v36 = vld [vmem:[%s854_s2 + $0x58] sm:$0x7] }
  0x11   :  { %v30_v40 = vld [vmem:[%s852_s0 + $0x78] sm:$0xff]  ;;  %s539_s0 = smov [#allocation2]  }
  0x12   :  { %33 = vxpose.xlu0.b32.cont [3/16] (narrow) %v17_v7, 96  ;;  %306 = vperm.xlu2 %486, %v272_v9   ;;  %s472_s9 = sshll.u32 %s539_s0, 4  ;;  %s473_s9 = int_to_ptr.vmem [resolvable:$true] %s472_s9 }
  0x13   :  { %301 = vperm.xlu1 %485, %v271_v8  }
  0x1a   :  { %34 = vxpose.xlu0.b32.cont [4/16] (narrow) %v18_v10, 96  ;;  %316 = vperm.xlu2 %486, %v274_v12  }
  0x1b   :  { %311 = vperm.xlu1 %485, %v273_v11  }
  0x22   :  { %35 = vxpose.xlu0.b32.cont [5/16] (narrow) %v19_v13, 96  ;;  %326 = vperm.xlu2 %486, %v276_v15  }
  0x23   :  { %321 = vperm.xlu1 %485, %v275_v14  }
  0x2a   :  { %36 = vxpose.xlu0.b32.cont [6/16] (narrow) %v20_v16, 96  ;;  %365 = vperm.xlu2 %486, %v351_v18  }
  0x2b   :  { %331 = vperm.xlu1 %485, %v277_v17  }
  0x32   :  { %37 = vxpose.xlu0.b32.cont [7/16] (narrow) %v21_v19, 96  ;;  %375 = vperm.xlu2 %486, %v353_v21  }
  0x33   :  { %370 = vperm.xlu1 %485, %v352_v20  }
  0x3a   :  { %38 = vxpose.xlu0.b32.cont [8/16] (narrow) %v22_v22, 96  ;;  %385 = vperm.xlu2 %486, %v355_v24  }
  0x3b   :  { %380 = vperm.xlu1 %485, %v354_v23  }
  0x42   :  { %39 = vxpose.xlu0.b32.cont [9/16] (narrow) %v23_v25, 96  ;;  %395 = vperm.xlu2 %486, %v357_v27  }
  0x43   :  { %390 = vperm.xlu1 %485, %v356_v26  }
  0x4a   :  { %40 = vxpose.xlu0.b32.cont [10/16] (narrow) %v24_v28, 96  ;;  %405 = vperm.xlu2 %486, %v359_v30  }
  0x4b   :  { %400 = vperm.xlu1 %485, %v358_v29  }
  0x52   :  { %41 = vxpose.xlu0.b32.cont [11/16] (narrow) %v25_v31, 96  ;;  %336 = vperm.xlu2 %486, %v278_v33  }
  0x53   :  { %410 = vperm.xlu1 %485, %v360_v32  }
  0x5a   :  { %42 = vxpose.xlu0.b32.cont [12/16] (narrow) %v26_v34, 96  ;;  %420 = vperm.xlu2 %486, %v362_v36  }
  0x5b   :  { %415 = vperm.xlu1 %485, %v361_v35  }
  0x5c   :  { %v682_v42 = vpop.permute.xlu2 %291 }
  0x62   :  { %43 = vxpose.xlu0.b32.cont [13/16] (narrow) %v27_v37, 96 }
  0x64   :  { %v686_v44 = vpop.permute.xlu2 %296 }
  0x6a   :  { %44 = vxpose.xlu0.b32.cont [14/16] (narrow) %v28_v38, 96 }
  0x6c   :  { %v690_v46 = vpop.permute.xlu2 %306 }
  0x72   :  { %45 = vxpose.xlu0.b32.cont [15/16] (narrow) %v29_v39, 96 }
  0x74   :  { %v694_v49 = vpop.permute.xlu2 %316 }
  0x75   :  { %v282_v41 = vpop.permute.xlu1 %281 }
  0x7a   :  { %46 = vxpose.xlu0.b32.end [16/16] (narrow) %v30_v40, 96 }
  0x7c   :  { %v698_v60 = vpop.permute.xlu2 %326 }
  0x7d   :  { %v684_v43 = vpop.permute.xlu1 %286 }
  0x84   :  { %v366_v18 = vpop.permute.xlu2 %365 }
  0x85   :  { %v688_v45 = vpop.permute.xlu1 %301 }
  0x8d   :  { %v692_v48 = vpop.permute.xlu1 %311 }
  0x95   :  { %v696_v57 = vpop.permute.xlu1 %321 }
  0x9d   :  { %v700_v12 = vpop.permute.xlu1 %331 }
  0xa5   :  { %v371_v34 = vpop.permute.xlu1 %370 }
  0xa6   :  { %v47_v47 = vpop.trf.xlu0 }
  0xa7   :  { %488 = vrcp.f32 %v47_v47  ;;  %v74_v54 = vand.u32 2147483648, %v47_v47  ;;  %v72_v56 = vand.u32 2147483647, %v47_v47  ;;  %vm68_vm1 = vweird.f32 %v47_v47 }
  0xa9   :  { %v75_v61 = vor.u32 1.1754944e-38, %v74_v54  ;;  %vm73_vm3 = vcmp.eq.f32.partialorder %v72_v56, 8.507059e+37 }
  0xad   :  { %v489_v50 = vpop.eup %488 }
  0xae   :  { %v64_v51 = vmul.f32 %v489_v50, %v47_v47  ;;  %v48_v52 = vpop.trf.xlu0  ;;  %vm69_vm0 = vweird.f32 %v489_v50 }
  0xaf   :  { %490 = vrcp.f32 %v48_v52  ;;  %vm70_vm2 = vmor %vm68_vm1, %vm69_vm0  ;;  %v88_v5 = vand.u32 2147483648, %v48_v52  ;;  %v86_v8 = vand.u32 2147483647, %v48_v52  ;;  %vm82_vm5 = vweird.f32 %v48_v52 }
  0xb0   :  { %v65_v53 = vsub.f32 1.0, %v64_v51  ;;  %v376_v51 = vpop.permute.xlu2 %375 }
  0xb1   :  { %v89_v13 = vor.u32 1.1754944e-38, %v88_v5  ;;  %vm87_vm7 = vcmp.eq.f32.partialorder %v86_v8, 8.507059e+37 }
  0xb2   :  { %v66_v55 = vmul.f32 %v489_v50, %v65_v53 }
  0xb4   :  { %v67_v58 = vadd.f32 %v489_v50, %v66_v55 }
  0xb5   :  { %v491_v59 = vpop.eup %490 }
  0xb6   :  { %v71_v62 = vsel %vm70_vm2, %v489_v50, %v67_v58  ;;  %v78_v63 = vmul.f32 %v491_v59, %v48_v52  ;;  %v49_v0 = vpop.trf.xlu0  ;;  %vm83_vm4 = vweird.f32 %v491_v59 }
  0xb7   :  { %v76_v1 = vsel %vm73_vm3, %v75_v61, %v71_v62  ;;  %492 = vrcp.f32 %v49_v0  ;;  %vm84_vm6 = vmor %vm82_vm5, %vm83_vm4  ;;  %v100_v23 = vand.u32 2147483647, %v49_v0  ;;  %v102_v24 = vand.u32 2147483648, %v49_v0 }
  0xb8   :  { %v231_v3 = vmul.f32 %v76_v1, %v76_v1  ;;  %v79_v4 = vsub.f32 1.0, %v78_v63  ;;  %vm96_vm9 = vweird.f32 %v49_v0 }
  0xb9   :  { %v103_v30 = vor.u32 1.1754944e-38, %v102_v24  ;;  %vm101_vm11 = vcmp.eq.f32.partialorder %v100_v23, 8.507059e+37 }
  0xba   :  { %v243_v6 = vmul.f32 %v231_v3, %v231_v3  ;;  %v80_v7 = vmul.f32 %v491_v59, %v79_v4 }
  0xbc   :  { %v255_v9 = vmul.f32 %v243_v6, %v231_v3  ;;  %v81_v10 = vadd.f32 %v491_v59, %v80_v7 }
  0xbd   :  { %v493_v11 = vpop.eup %492 }
  0xbe   :  { %v339_v14 = vmul.f32 %v282_v41, %v255_v9  ;;  %v85_v15 = vsel %vm84_vm6, %v491_v59, %v81_v10  ;;  %v92_v16 = vmul.f32 %v493_v11, %v49_v0  ;;  %v702_v17 = vpop.trf.xlu0  ;;  %vm97_vm8 = vweird.f32 %v493_v11 }
  0xbf   :  { %v90_v19 = vsel %vm87_vm7, %v89_v13, %v85_v15  ;;  %vm98_vm10 = vmor %vm96_vm9, %vm97_vm8  ;;  %494 = vrcp.f32 %v702_v17  ;;  %vm110_vm13 = vweird.f32 %v702_v17 }
  0xc0   :  { %v423_v20 = vsub.f32 %v339_v14, %v366_v18  ;;  %v232_v21 = vmul.f32 %v90_v19, %v90_v19  ;;  %v93_v22 = vsub.f32 1.0, %v92_v16  ;;  %v744_v19 = vpop.permute.xlu1 %380 }
  0xc2   :  { %v435_v25 = vmul.f32 %v423_v20, %v255_v9  ;;  %v244_v26 = vmul.f32 %v232_v21, %v232_v21  ;;  %v94_v27 = vmul.f32 %v493_v11, %v93_v22  ;;  %v116_v9 = vand.u32 2147483648, %v702_v17 }
  0xc4   :  { %v256_v28 = vmul.f32 %v244_v26, %v232_v21  ;;  %v95_v29 = vadd.f32 %v493_v11, %v94_v27  ;;  %v117_v20 = vor.u32 1.1754944e-38, %v116_v9 }
  0xc5   :  { %v495_v54 = vpop.eup %494 }
  0xc6   :  { %v340_v31 = vmul.f32 %v684_v43, %v256_v28  ;;  %v99_v32 = vsel %vm98_vm10, %v493_v11, %v95_v29  ;;  %v705_v33 = vpop.trf.xlu0  ;;  %v106_v58 = vmul.f32 %v495_v54, %v702_v17  ;;  %vm111_vm12 = vweird.f32 %v495_v54 }
  0xc7   :  { %v104_v35 = vsel %vm101_vm11, %v103_v30, %v99_v32  ;;  %496 = vrcp.f32 %v705_v33  ;;  %v114_v11 = vand.u32 2147483647, %v702_v17  ;;  %vm112_vm14 = vmor %vm110_vm13, %vm111_vm12  ;;  %v130_v14 = vand.u32 2147483648, %v705_v33 }
  0xc8   :  { %v424_v36 = vsub.f32 %v340_v31, %v371_v34  ;;  %v233_v37 = vmul.f32 %v104_v35, %v104_v35  ;;  %v107_v59 = vsub.f32 1.0, %v106_v58  ;;  %vm124_vm0 = vweird.f32 %v705_v33 }
  0xc9   :  { %v128_v17 = vand.u32 2147483647, %v705_v33  ;;  %vm115_vm1 = vcmp.eq.f32.partialorder %v114_v11, 8.507059e+37 }
  0xca   :  { %v436_v38 = vmul.f32 %v424_v36, %v256_v28  ;;  %v245_v39 = vmul.f32 %v233_v37, %v233_v37  ;;  %v108_v0 = vmul.f32 %v495_v54, %v107_v59 }
  0xcb   :  { %vm129_vm4 = vcmp.eq.f32.partialorder %v128_v17, 8.507059e+37 }
  0xcc   :  { %v447_v40 = vadd.f32 %v436_v38, %v435_v25  ;;  %v257_v41 = vmul.f32 %v245_v39, %v233_v37  ;;  %v109_v6 = vadd.f32 %v495_v54, %v108_v0  ;;  %v131_v25 = vor.u32 1.1754944e-38, %v130_v14 }
  0xcd   :  { %v497_v56 = vpop.eup %496 }
  0xce   :  { %v341_v47 = vmul.f32 %v682_v42, %v257_v41  ;;  %v708_v50 = vpop.trf.xlu0  ;;  %v120_v42 = vmul.f32 %v497_v56, %v705_v33  ;;  %vm125_vm15 = vweird.f32 %v497_v56  ;;  %v113_v15 = vsel %vm112_vm14, %v495_v54, %v109_v6  ;;  %v766_v33 = vpop.permute.xlu2 %385 }
  0xcf   :  { %498 = vrcp.f32 %v708_v50  ;;  %vm748_vm2 = vmor %vm124_vm0, %vm125_vm15  ;;  %v118_v23 = vsel %vm115_vm1, %v117_v20, %v113_v15  ;;  %v142_v26 = vand.u32 2147483647, %v708_v50  ;;  %v144_v29 = vand.u32 2147483648, %v708_v50 }
  0xd0   :  { %v425_v52 = vsub.f32 %v341_v47, %v376_v51  ;;  %v121_v63 = vsub.f32 1.0, %v120_v42  ;;  %vm138_vm5 = vweird.f32 %v708_v50  ;;  %v234_v34 = vmul.f32 %v118_v23, %v118_v23 }
  0xd1   :  { %vm143_vm7 = vcmp.eq.f32.partialorder %v142_v26, 8.507059e+37 }
  0xd2   :  { %v437_v43 = vmul.f32 %v425_v52, %v257_v41  ;;  %v122_v4 = vmul.f32 %v497_v56, %v121_v63 }
  0xd4   :  { %v712_v53 = vadd.f32 %v447_v40, %v437_v43  ;;  %v123_v13 = vadd.f32 %v497_v56, %v122_v4  ;;  %v145_v40 = vor.u32 1.1754944e-38, %v144_v29  ;;  %v246_v43 = vmul.f32 %v234_v34, %v234_v34 }
  0xd5   :  { %v720_v61 = vpop.eup %498 }
  0xd6   :  { %v714_v55 = vpop.trf.xlu0  ;;  %v134_v1 = vmul.f32 %v720_v61, %v708_v50  ;;  %v127_v24 = vsel %vm748_vm2, %v497_v56, %v123_v13  ;;  %vm139_vm3 = vweird.f32 %v720_v61  ;;  %v785_v56 = vpop.permute.xlu1 %390 }
  0xd7   :  { %500 = vrcp.f32 %v714_v55  ;;  %v132_v35 = vsel %vm129_vm4, %v131_v25, %v127_v24  ;;  %vm770_vm6 = vmor %vm138_vm5, %vm139_vm3  ;;  %v156_v50 = vand.u32 2147483647, %v714_v55  ;;  %v158_v51 = vand.u32 2147483648, %v714_v55 }
  0xd8   :  { %v135_v7 = vsub.f32 1.0, %v134_v1  ;;  %v235_v47 = vmul.f32 %v132_v35, %v132_v35  ;;  %vm152_vm9 = vweird.f32 %v714_v55 }
  0xd9   :  { %vm157_vm14 = vcmp.eq.f32.partialorder %v156_v50, 8.507059e+37  ;;  %v159_v6 = vor.u32 1.1754944e-38, %v158_v51 }
  0xda   :  { %v136_v16 = vmul.f32 %v720_v61, %v135_v7  ;;  %v247_v4 = vmul.f32 %v235_v47, %v235_v47 }
  0xdc   :  { %v137_v28 = vadd.f32 %v720_v61, %v136_v16  ;;  %v821_v16 = vpop.permute.xlu2 %395  ;;  %v259_v24 = vmul.f32 %v247_v4, %v235_v47 }
  0xdd   :  { %v728_v3 = vpop.eup %500 }
  0xde   :  { %v722_v62 = vpop.trf.xlu0  ;;  %v148_v8 = vmul.f32 %v728_v3, %v714_v55  ;;  %v141_v39 = vsel %vm770_vm6, %v720_v61, %v137_v28  ;;  %vm153_vm8 = vweird.f32 %v728_v3 }
  0xdf   :  { %502 = vrcp.f32 %v722_v62  ;;  %v146_v58 = vsel %vm143_vm7, %v145_v40, %v141_v39  ;;  %vm787_vm11 = vmor %vm152_vm9, %vm153_vm8  ;;  %vm166_vm12 = vweird.f32 %v722_v62  ;;  %v170_v59 = vand.u32 2147483647, %v722_v62 }
  0xe0   :  { %v149_v18 = vsub.f32 1.0, %v148_v8  ;;  %v172_v61 = vand.u32 2147483648, %v722_v62  ;;  %v236_v11 = vmul.f32 %v146_v58, %v146_v58 }
  0xe1   :  { %487 = vset.pattern.permute.xlu0 %v538_v2  ;;  %vm171_vm2 = vcmp.eq.f32.partialorder %v170_v59, 8.507059e+37 }
  0xe2   :  { %v150_v30 = vmul.f32 %v728_v3, %v149_v18  ;;  %v173_v13 = vor.u32 1.1754944e-38, %v172_v61  ;;  %v248_v29 = vmul.f32 %v236_v11, %v236_v11 }
  0xe4   :  { %v151_v41 = vadd.f32 %v728_v3, %v150_v30  ;;  %v260_v47 = vmul.f32 %v248_v29, %v236_v11  ;;  %v406_v58 = vpop.permute.xlu2 %405 }
  0xe5   :  { %v730_v5 = vpop.eup %502 }
  0xe6   :  { %v735_v10 = vpop.trf.xlu0  ;;  %v162_v2 = vmul.f32 %v730_v5, %v722_v62  ;;  %vm167_vm10 = vweird.f32 %v730_v5  ;;  %v155_v55 = vsel %vm787_vm11, %v728_v3, %v151_v41 }
  0xe7   :  { %504 = vrcp.f32 %v735_v10  ;;  %v186_v1 = vand.u32 2147483648, %v735_v10  ;;  %vm802_vm15 = vmor %vm166_vm12, %vm167_vm10  ;;  %vm180_vm0 = vweird.f32 %v735_v10  ;;  %v184_v9 = vand.u32 2147483647, %v735_v10 }
  0xe8   :  { %v163_v22 = vsub.f32 1.0, %v162_v2  ;;  %v160_v2 = vsel %vm157_vm14, %v159_v6, %v155_v55  ;;  %v344_v55 = vmul.f32 %v690_v46, %v260_v47 }
  0xe9   :  { %v237_v23 = vmul.f32 %v160_v2, %v160_v2  ;;  %vm185_vm4 = vcmp.eq.f32.partialorder %v184_v9, 8.507059e+37 }
  0xea   :  { %v164_v36 = vmul.f32 %v730_v5, %v163_v22  ;;  %v258_v22 = vmul.f32 %v246_v43, %v234_v34 }
  0xeb   :  { %v249_v34 = vmul.f32 %v237_v23, %v237_v23 }
  0xec   :  { %v165_v54 = vadd.f32 %v730_v5, %v164_v36  ;;  %v342_v40 = vmul.f32 %v686_v44, %v258_v22 }
  0xed   :  { %v755_v27 = vpop.eup %504  ;;  %v261_v42 = vmul.f32 %v249_v34, %v237_v23  ;;  %v337_v23 = vpop.permute.xlu2 %336 }
  0xee   :  { %v176_v31 = vmul.f32 %v755_v27, %v735_v10  ;;  %v764_v32 = vpop.trf.xlu0  ;;  %vm181_vm13 = vweird.f32 %v755_v27  ;;  %v169_v3 = vsel %vm802_vm15, %v730_v5, %v165_v54  ;;  %v187_v10 = vor.u32 1.1754944e-38, %v186_v1 }
  0xef   :  { %506 = vrcp.f32 %v764_v32  ;;  %vm817_vm1 = vmor %vm180_vm0, %vm181_vm13  ;;  %v200_v18 = vand.u32 2147483648, %v764_v32  ;;  %v174_v20 = vsel %vm171_vm2, %v173_v13, %v169_v3  ;;  %v198_v21 = vand.u32 2147483647, %v764_v32 }
  0xf0   :  { %v177_v38 = vsub.f32 1.0, %v176_v31  ;;  %vm194_vm5 = vweird.f32 %v764_v32  ;;  %v238_v30 = vmul.f32 %v174_v20, %v174_v20  ;;  %v829_v31 = vpop.permute.xlu1 %400  ;;  %v426_v61 = vsub.f32 %v342_v40, %v744_v19 }
  0xf1   :  { %vm199_vm7 = vcmp.eq.f32.partialorder %v198_v21, 8.507059e+37  ;;  %vm457_vm0 = vcmask 1042432  }
  0xf2   :  { %v178_v52 = vmul.f32 %v755_v27, %v177_v38  ;;  %v250_v50 = vmul.f32 %v238_v30, %v238_v30  ;;  %v438_v19 = vmul.f32 %v426_v61, %v258_v22 }
  0xf4   :  { %v179_v0 = vadd.f32 %v755_v27, %v178_v52 }
  0xf5   :  { %v507_v63 = vpop.eup %506 }
  0xf6   :  { %v190_v62 = vmul.f32 %v507_v63, %v764_v32  ;;  %v807_v8 = vpop.trf.xlu0  ;;  %v183_v5 = vsel %vm817_vm1, %v755_v27, %v179_v0  ;;  %vm195_vm3 = vweird.f32 %v507_v63  ;;  %v201_v27 = vor.u32 1.1754944e-38, %v200_v18 }
  0xf7   :  { %508 = vrcp.f32 %v807_v8  ;;  %v188_v25 = vsel %vm185_vm4, %v187_v10, %v183_v5  ;;  %vm196_vm6 = vmor %vm194_vm5, %vm195_vm3  ;;  %v343_v32 = vmul.f32 %v688_v45, %v259_v24  ;;  %v214_v52 = vand.u32 2147483648, %v807_v8 }
  0xf8   :  { %v191_v15 = vsub.f32 1.0, %v190_v62  ;;  %v239_v38 = vmul.f32 %v188_v25, %v188_v25  ;;  %v212_v54 = vand.u32 2147483647, %v807_v8  ;;  %vm208_vm9 = vweird.f32 %v807_v8  ;;  %v411_v11 = vpop.permute.xlu1 %410 }
  0xf9   :  { %v262_v0 = vmul.f32 %v250_v50, %v238_v30  ;;  %v215_v4 = vor.u32 1.1754944e-38, %v214_v52  ;;  %v345_v62 = vmul.f32 %v692_v48, %v261_v42 }
  0xfa   :  { %v192_v17 = vmul.f32 %v507_v63, %v191_v15  ;;  %v251_v59 = vmul.f32 %v239_v38, %v239_v38  ;;  %vm213_vm11 = vcmp.eq.f32.partialorder %v212_v54, 8.507059e+37 }
  0xfb   :  { %v346_v46 = vmul.f32 %v694_v49, %v262_v0  ;;  %v429_v20 = vsub.f32 %v345_v62, %v821_v16 }
  0xfc   :  { %v193_v26 = vadd.f32 %v507_v63, %v192_v17  ;;  %v263_v3 = vmul.f32 %v251_v59, %v239_v38  ;;  %v449_v17 = vadd.f32 %v712_v53, %v438_v19 }
  0xfd   :  { %v509_v28 = vpop.eup %508  ;;  %v441_v29 = vmul.f32 %v429_v20, %v261_v42 }
  0xfe   :  { %v197_v35 = vsel %vm196_vm6, %v507_v63, %v193_v26  ;;  %v204_v36 = vmul.f32 %v509_v28, %v807_v8  ;;  %v58_v37 = vpop.trf.xlu0  ;;  %vm209_vm8 = vweird.f32 %v509_v28  ;;  %v427_v63 = vsub.f32 %v343_v32, %v766_v33 }
  0xff   :  { %v202_v39 = vsel %vm199_vm7, %v201_v27, %v197_v35  ;;  %510 = vrcp.f32 %v58_v37  ;;  %vm210_vm10 = vmor %vm208_vm9, %vm209_vm8  ;;  %v428_v8 = vsub.f32 %v344_v55, %v785_v56  ;;  %v228_v15 = vand.u32 2147483648, %v58_v37 }
 0x100   :  { %v205_v41 = vsub.f32 1.0, %v204_v36  ;;  %v240_v51 = vmul.f32 %v202_v39, %v202_v39  ;;  %v439_v33 = vmul.f32 %v427_v63, %v259_v24  ;;  %v226_v18 = vand.u32 2147483647, %v58_v37 }
 0x101   :  { %v347_v48 = vmul.f32 %v696_v57, %v263_v3  ;;  %vm222_vm13 = vweird.f32 %v58_v37  ;;  %v440_v24 = vmul.f32 %v428_v8, %v260_v47  ;;  %v430_v56 = vsub.f32 %v346_v46, %v829_v31  ;;  %v421_v47 = vpop.permute.xlu2 %420 }
 0x102   :  { %v206_v43 = vmul.f32 %v509_v28, %v205_v41  ;;  %v252_v1 = vmul.f32 %v240_v51, %v240_v51  ;;  %v229_v25 = vor.u32 1.1754944e-38, %v228_v15  ;;  %v450_v26 = vadd.f32 %v449_v17, %v439_v33 }
 0x103   :  { %vm227_vm15 = vcmp.eq.f32.partialorder %v226_v18, 8.507059e+37  ;;  %v431_v16 = vsub.f32 %v347_v48, %v406_v58  ;;  %v442_v35 = vmul.f32 %v430_v56, %v262_v0 }
 0x104   :  { %v207_v44 = vadd.f32 %v509_v28, %v206_v43  ;;  %v264_v14 = vmul.f32 %v252_v1, %v240_v51  ;;  %v451_v27 = vadd.f32 %v450_v26, %v440_v24 }
 0x105   :  { %v511_v45 = vpop.eup %510  ;;  %v443_v31 = vmul.f32 %v431_v16, %v263_v3 }
 0x106   :  { %v211_v6 = vsel %vm210_vm10, %v509_v28, %v207_v44  ;;  %v218_v7 = vmul.f32 %v511_v45, %v58_v37  ;;  %vm223_vm12 = vweird.f32 %v511_v45  ;;  %v348_v49 = vmul.f32 %v698_v60, %v264_v14  ;;  %v416_v37 = vpop.permute.xlu1 %415 }
 0x107   :  { %v216_v9 = vsel %vm213_vm11, %v215_v4, %v211_v6  ;;  %vm224_vm14 = vmor %vm222_vm13, %vm223_vm12  ;;  %v452_v38 = vadd.f32 %v451_v27, %v441_v29 }
 0x108   :  { %v241_v2 = vmul.f32 %v216_v9, %v216_v9  ;;  %v219_v13 = vsub.f32 1.0, %v218_v7  ;;  %v432_v36 = vsub.f32 %v348_v49, %v411_v11 }
 0x109   :  { %v453_v40 = vadd.f32 %v452_v38, %v442_v35 }
 0x10a   :  { %v253_v5 = vmul.f32 %v241_v2, %v241_v2  ;;  %v220_v10 = vmul.f32 %v511_v45, %v219_v13  ;;  %v444_v32 = vmul.f32 %v432_v36, %v264_v14 }
 0x10b   :  { %v454_v51 = vadd.f32 %v453_v40, %v443_v31 }
 0x10c   :  { %v265_v21 = vmul.f32 %v253_v5, %v241_v2  ;;  %v221_v22 = vadd.f32 %v511_v45, %v220_v10 }
 0x10d   :  { %v455_v43 = vadd.f32 %v454_v51, %v444_v32 }
 0x10e   :  { %v225_v28 = vsel %vm224_vm14, %v511_v45, %v221_v22  ;;  %v349_v57 = vmul.f32 %v700_v12, %v265_v21 }
 0x10f   :  { %v230_v30 = vsel %vm227_vm15, %v229_v25, %v225_v28 }
 0x110   :  { %v242_v53 = vmul.f32 %v230_v30, %v230_v30  ;;  %v433_v39 = vsub.f32 %v349_v57, %v416_v37 }
 0x112   :  { %v254_v34 = vmul.f32 %v242_v53, %v242_v53  ;;  %v445_v50 = vmul.f32 %v433_v39, %v265_v21 }
 0x114   :  { %v266_v60 = vmul.f32 %v254_v34, %v242_v53  ;;  %v456_v54 = vadd.f32 %v455_v43, %v445_v50 }
 0x116   :  { %v350_v41 = vmul.f32 %v337_v23, %v266_v60 }
 0x118   :  { %v434_v52 = vsub.f32 %v350_v41, %v421_v47 }
 0x11a   :  { %v446_v12 = vmul.f32 %v434_v52, %v266_v60 }
 0x11c   :  { %v458_v58 = vsel %vm457_vm0, %v446_v12, 0.0 }
 0x11d   :  { %v459_v42 = vadd.f32 %v458_v58, %v456_v54 }
 0x11f   :  { %v460_v59 = vrot.slane %v459_v42, 4 }
 0x121   :  { %v461_v61 = vadd.f32 %v460_v59, %v459_v42 }
 0x123   :  { %v462_v63 = vrot.slane %v461_v61, 2 }
 0x125   :  { %v463_v44 = vadd.f32 %v462_v63, %v461_v61 }
 0x127   :  { %v464_v45 = vrot.slane %v463_v44, 1 }
 0x129   :  { %v465_v55 = vadd.f32 %v464_v45, %v463_v44 }
 0x12b   :  { %466 = vst [vmem:[#allocation2] sm:$0x1] %v465_v55 }
 0x12c   :  { %477 = dma.vmem_to_hbm [thread:$0]  %s473_s9, 16, %s475_s12, [#allocation3]  }
 0x12d   :  { %536 = dma.done.wait [#allocation3], 16  }
 0x12e   :  { %537 = vsyncadd [#allocation3], 4294967280 }
 0x12f   :  { %482 = vsyncpa [#allocation3], 1 }

</bundles_post_ra>
